<compile_context>
chip_gen: v7x
topology: tpu7x:2x2x1
jax: 0.10.0
libtpu: 0.0.40
codegen_flags: <defaults>
</compile_context>

<pallas_src>
import jax
import jax.numpy as jnp
import numpy as np
from jax.experimental import pallas as pl
from jax.experimental.pallas import tpu as pltpu


# ---------------------------------------------------------------------------
# Glue: Rodrigues vector -> rotation matrix (tiny (3,) param, plain JAX)
# ---------------------------------------------------------------------------
def rodrigues_to_rot(r):
    """r: (3,) float32 -> R: (3,3) float32 (matches Camera.convert_to_rot_matrix)."""
    theta = jnp.sqrt(jnp.sum(r * r))
    r_hat = r / (theta + 1e-8)
    x, y, z = r_hat[0], r_hat[1], r_hat[2]
    zero = jnp.zeros_like(x)
    Kx = jnp.stack(
        [
            jnp.stack([zero, -z, y]),
            jnp.stack([z, zero, -x]),
            jnp.stack([-y, x, zero]),
        ]
    )
    I = jnp.eye(3, dtype=r.dtype)
    R = I + jnp.sin(theta) * Kx + (1.0 - jnp.cos(theta)) * (Kx @ Kx)
    return R.astype(jnp.float32)


def fuse_camera_coeffs(K, r, t):
    """Fuse K @ (R @ X + t) into M @ X + b;  returns (12,) = [m00..m22, b0..b2]."""
    R = rodrigues_to_rot(jnp.asarray(r, jnp.float32))
    Kf = jnp.asarray(K, jnp.float32)
    M = Kf @ R                                                  # (3,3)
    b = (Kf @ jnp.asarray(t, jnp.float32).reshape(3, 1)).reshape(3)  # (3,)
    return jnp.concatenate([M.reshape(-1), b]).astype(jnp.float32)


# ---------------------------------------------------------------------------
# Pallas kernel: fused affine map + perspective divide (pure VPU/EUP, lane-dense)
# ---------------------------------------------------------------------------
def camera_kernel(coef_ref, xt_ref, o_ref):
    # coef_ref: SMEM (12,) = [m00..m22, b0, b1, b2]  with M = K@R, b = K@t
    # xt_ref  : VMEM (3, TP, 128) coordinate-major point tile
    # o_ref   : VMEM (2, TP, 128) projected pixel coordinates
    x = xt_ref[0]
    y = xt_ref[1]
    z = xt_ref[2]

    m00, m01, m02 = coef_ref[0], coef_ref[1], coef_ref[2]
    m10, m11, m12 = coef_ref[3], coef_ref[4], coef_ref[5]
    m20, m21, m22 = coef_ref[6], coef_ref[7], coef_ref[8]
    b0, b1, b2 = coef_ref[9], coef_ref[10], coef_ref[11]

    px = m00 * x + m01 * y + m02 * z + b0
    py = m10 * x + m11 * y + m12 * z + b1
    pz = m20 * x + m21 * y + m22 * z + b2

    # Approx reciprocal on the EUP (free slot) + one Newton-Raphson step on the
    # VPU (2 ops/point) -> ~full f32 accuracy without the exact-divide VALU
    # sequence that could make v7x VALU-bound.
    d = pz + 1e-8
    r0 = pl.reciprocal(d, approx=True)
    rcp = r0 * (2.0 - d * r0)

    o_ref[0] = px * rcp
    o_ref[1] = py * rcp


# ---------------------------------------------------------------------------
# Tile sizing: big tiles (mem-bound), but keep >= 2 tiles for v7x megacore.
# ---------------------------------------------------------------------------
def _choose_block_rows(p_rows, requested=None, max_rows=512):
    if requested is None:
        br = min(max_rows, max(8, pl.cdiv(p_rows, 2)))
    else:
        br = requested
    return max(8, ((int(br) + 7) // 8) * 8)  # multiple of 8 sublanes


# ---------------------------------------------------------------------------
# Coordinate-major fast path: (3, N) -> (2, N), no API-layout copies.
# ---------------------------------------------------------------------------
def camera_project_cm(coef, X_cm, *, block_rows=None, lanes=128):
    """coef: (12,) fused coeffs; X_cm: (3, N) coord-major f32 points -> (2, N)."""
    N = X_cm.shape[1]
    p_rows = pl.cdiv(N, lanes)
    block_rows = _choose_block_rows(p_rows, block_rows)
    pts_per_tile = block_rows * lanes
    n_tiles = pl.cdiv(N, pts_per_tile)
    n_pad = n_tiles * pts_per_tile
    P = n_pad // lanes

    X_cm = X_cm.astype(jnp.float32)
    if n_pad != N:
        X_cm = jnp.pad(X_cm, ((0, 0), (0, n_pad - N)))
    Xt = X_cm.reshape(3, P, lanes)

    out = pl.pallas_call(
        camera_kernel,
        out_shape=jax.ShapeDtypeStruct((2, P, lanes), jnp.float32),
        grid_spec=pltpu.PrefetchScalarGridSpec(
            num_scalar_prefetch=0,
            grid=(n_tiles,),
            in_specs=[
                # 12 affine coefficients, resident in SMEM for the whole grid
                pl.BlockSpec(memory_space=pltpu.MemorySpace.SMEM),
                # dense (3, block_rows, 128) point tile per grid step
                pl.BlockSpec((3, block_rows, lanes), lambda i: (0, i, 0)),
            ],
            out_specs=pl.BlockSpec((2, block_rows, lanes), lambda i: (0, i, 0)),
        ),
        compiler_params=pltpu.CompilerParams(
            dimension_semantics=("parallel",),
        ),
    )(coef, Xt)

    out = out.reshape(2, n_pad)
    if n_pad != N:
        out = out[:, :N]
    return out  # (2, N) coordinate-major


# ---------------------------------------------------------------------------
# Torch-API wrapper: Camera.forward(K, X) with parameters (r, t)
# ---------------------------------------------------------------------------
def camera_forward(K, r, t, X, *, block_rows=None, lanes=128):
    """K: (3,3), r: (3,), t: (3,1), X: (N,3) -> (N,2).

    Note: the X.T / final .T here are only to match the torch row-major API;
    use camera_project_cm directly with coordinate-major data to avoid these
    extra HBM copies in a bandwidth-bound pipeline.
    """
    coef = fuse_camera_coeffs(K, r, t)
    out_cm = camera_project_cm(coef, X.T.astype(jnp.float32),
                               block_rows=block_rows, lanes=lanes)
    return out_cm.T  # (N, 2)


# Pure-JAX reference mirroring the torch code (column form, un-fused) for checks.
def camera_forward_ref(K, r, t, X):
    R = rodrigues_to_rot(r)
    x = K @ (R @ X.T + t)          # (3,N), t (3,1) broadcasts over columns
    x = x / (x[-1] + 1e-8)
    x = x.T
    return x[:, :-1]


if __name__ == "__main__":
    key = jax.random.PRNGKey(0)
    N = 2000  # deliberately NOT a multiple of the tile size (exercises padding)

    # Deterministic parameters (shapes implied by Camera.__init__ / forward).
    r = jnp.array([0.1, 0.2, 0.3], dtype=jnp.float32)               # Rodrigues vec
    t = jnp.array([[0.5], [-0.2], [1.5]], dtype=jnp.float32)        # translation (3,1)
    K = jnp.array(
        [[100.0, 0.0, 8.0],
         [0.0, 100.0, 8.0],
         [0.0, 0.0, 1.0]], dtype=jnp.float32)                       # intrinsics

    X = jax.random.normal(key, (N, 3), dtype=jnp.float32) + jnp.array(
        [0.0, 0.0, 5.0], dtype=jnp.float32
    )  # points in front of the camera

    # Torch-API path (matches Camera.forward layout exactly).
    out = jax.block_until_ready(camera_forward(K, r, t, X))
    ref = camera_forward_ref(K, r, t, X)
    np.testing.assert_allclose(np.asarray(out), np.asarray(ref), rtol=1e-4, atol=1e-4)

    # Coordinate-major fast path (copy-free layout) gives the same numbers.
    coef = fuse_camera_coeffs(K, r, t)
    out_cm = jax.block_until_ready(camera_project_cm(coef, X.T))
    np.testing.assert_allclose(np.asarray(out_cm), np.asarray(ref.T),
                               rtol=1e-4, atol=1e-4)

    print("KERNEL_OK")
</pallas_src>

<mosaic_0001>
module attributes {stable_mosaic.version = 11 : i64} {
  func.func @camera_kernel(%arg0: i32, %arg1: memref<12xf32, #tpu.memory_space<smem>>, %arg2: memref<3x8x128xf32, #tpu.memory_space<vmem>>, %arg3: memref<2x8x128xf32, #tpu.memory_space<vmem>>) attributes {dimension_semantics = [#tpu.dimension_semantics<parallel>], iteration_bounds = array<i64: 2>, scalar_prefetch = 0 : i64, scratch_operands = 0 : i64, tpu.core_type = #tpu.core_type<tc>, window_params = [{transform_indices = @transform_0, window_bounds = array<i64: 12>}, {transform_indices = @transform_1, window_bounds = array<i64: 3, 8, 128>}, {transform_indices = @transform_2, window_bounds = array<i64: 2, 8, 128>}]} {
    %c0 = arith.constant 0 : index
    %c0_0 = arith.constant 0 : index
    %c0_1 = arith.constant 0 : index
    %0 = vector.load %arg2[%c0, %c0_0, %c0_1] : memref<3x8x128xf32, #tpu.memory_space<vmem>>, vector<1x8x128xf32>
    %1 = vector.shape_cast %0 : vector<1x8x128xf32> to vector<8x128xf32>
    %c1 = arith.constant 1 : index
    %c0_2 = arith.constant 0 : index
    %c0_3 = arith.constant 0 : index
    %2 = vector.load %arg2[%c1, %c0_2, %c0_3] : memref<3x8x128xf32, #tpu.memory_space<vmem>>, vector<1x8x128xf32>
    %3 = vector.shape_cast %2 : vector<1x8x128xf32> to vector<8x128xf32>
    %c2 = arith.constant 2 : index
    %c0_4 = arith.constant 0 : index
    %c0_5 = arith.constant 0 : index
    %4 = vector.load %arg2[%c2, %c0_4, %c0_5] : memref<3x8x128xf32, #tpu.memory_space<vmem>>, vector<1x8x128xf32>
    %5 = vector.shape_cast %4 : vector<1x8x128xf32> to vector<8x128xf32>
    %c0_6 = arith.constant 0 : index
    %6 = memref.load %arg1[%c0_6] : memref<12xf32, #tpu.memory_space<smem>>
    %c1_7 = arith.constant 1 : index
    %7 = memref.load %arg1[%c1_7] : memref<12xf32, #tpu.memory_space<smem>>
    %c2_8 = arith.constant 2 : index
    %8 = memref.load %arg1[%c2_8] : memref<12xf32, #tpu.memory_space<smem>>
    %c3 = arith.constant 3 : index
    %9 = memref.load %arg1[%c3] : memref<12xf32, #tpu.memory_space<smem>>
    %c4 = arith.constant 4 : index
    %10 = memref.load %arg1[%c4] : memref<12xf32, #tpu.memory_space<smem>>
    %c5 = arith.constant 5 : index
    %11 = memref.load %arg1[%c5] : memref<12xf32, #tpu.memory_space<smem>>
    %c6 = arith.constant 6 : index
    %12 = memref.load %arg1[%c6] : memref<12xf32, #tpu.memory_space<smem>>
    %c7 = arith.constant 7 : index
    %13 = memref.load %arg1[%c7] : memref<12xf32, #tpu.memory_space<smem>>
    %c8 = arith.constant 8 : index
    %14 = memref.load %arg1[%c8] : memref<12xf32, #tpu.memory_space<smem>>
    %c9 = arith.constant 9 : index
    %15 = memref.load %arg1[%c9] : memref<12xf32, #tpu.memory_space<smem>>
    %c10 = arith.constant 10 : index
    %16 = memref.load %arg1[%c10] : memref<12xf32, #tpu.memory_space<smem>>
    %c11 = arith.constant 11 : index
    %17 = memref.load %arg1[%c11] : memref<12xf32, #tpu.memory_space<smem>>
    %18 = vector.broadcast %6 : f32 to vector<8x128xf32>
    %19 = arith.mulf %18, %1 : vector<8x128xf32>
    %20 = vector.broadcast %7 : f32 to vector<8x128xf32>
    %21 = arith.mulf %20, %3 : vector<8x128xf32>
    %22 = arith.addf %19, %21 : vector<8x128xf32>
    %23 = vector.broadcast %8 : f32 to vector<8x128xf32>
    %24 = arith.mulf %23, %5 : vector<8x128xf32>
    %25 = arith.addf %22, %24 : vector<8x128xf32>
    %26 = vector.broadcast %15 : f32 to vector<8x128xf32>
    %27 = arith.addf %25, %26 : vector<8x128xf32>
    %28 = vector.broadcast %9 : f32 to vector<8x128xf32>
    %29 = arith.mulf %28, %1 : vector<8x128xf32>
    %30 = vector.broadcast %10 : f32 to vector<8x128xf32>
    %31 = arith.mulf %30, %3 : vector<8x128xf32>
    %32 = arith.addf %29, %31 : vector<8x128xf32>
    %33 = vector.broadcast %11 : f32 to vector<8x128xf32>
    %34 = arith.mulf %33, %5 : vector<8x128xf32>
    %35 = arith.addf %32, %34 : vector<8x128xf32>
    %36 = vector.broadcast %16 : f32 to vector<8x128xf32>
    %37 = arith.addf %35, %36 : vector<8x128xf32>
    %38 = vector.broadcast %12 : f32 to vector<8x128xf32>
    %39 = arith.mulf %38, %1 : vector<8x128xf32>
    %40 = vector.broadcast %13 : f32 to vector<8x128xf32>
    %41 = arith.mulf %40, %3 : vector<8x128xf32>
    %42 = arith.addf %39, %41 : vector<8x128xf32>
    %43 = vector.broadcast %14 : f32 to vector<8x128xf32>
    %44 = arith.mulf %43, %5 : vector<8x128xf32>
    %45 = arith.addf %42, %44 : vector<8x128xf32>
    %46 = vector.broadcast %17 : f32 to vector<8x128xf32>
    %47 = arith.addf %45, %46 : vector<8x128xf32>
    %cst = arith.constant 9.99999993E-9 : f32
    %48 = vector.broadcast %cst : f32 to vector<8x128xf32>
    %49 = arith.addf %47, %48 : vector<8x128xf32>
    %50 = tpu.reciprocal %49 {approx = true} : vector<8x128xf32> -> vector<8x128xf32>
    %51 = arith.mulf %49, %50 : vector<8x128xf32>
    %cst_9 = arith.constant 2.000000e+00 : f32
    %52 = vector.broadcast %cst_9 : f32 to vector<8x128xf32>
    %53 = arith.subf %52, %51 : vector<8x128xf32>
    %54 = arith.mulf %50, %53 : vector<8x128xf32>
    %55 = arith.mulf %27, %54 : vector<8x128xf32>
    %c0_10 = arith.constant 0 : index
    %c0_11 = arith.constant 0 : index
    %c0_12 = arith.constant 0 : index
    %56 = vector.load %arg3[%c0_10, %c0_11, %c0_12] : memref<2x8x128xf32, #tpu.memory_space<vmem>>, vector<1x8x128xf32>
    %57 = vector.shape_cast %56 : vector<1x8x128xf32> to vector<8x128xf32>
    %58 = vector.shape_cast %55 : vector<8x128xf32> to vector<1x8x128xf32>
    tpu.vector_store %arg3[%c0_10, %c0_11, %c0_12], %58 {strides = array<i32>} : memref<2x8x128xf32, #tpu.memory_space<vmem>>, vector<1x8x128xf32>,
    %59 = arith.mulf %37, %54 : vector<8x128xf32>
    %c1_13 = arith.constant 1 : index
    %c0_14 = arith.constant 0 : index
    %c0_15 = arith.constant 0 : index
    %60 = vector.load %arg3[%c1_13, %c0_14, %c0_15] : memref<2x8x128xf32, #tpu.memory_space<vmem>>, vector<1x8x128xf32>
    %61 = vector.shape_cast %60 : vector<1x8x128xf32> to vector<8x128xf32>
    %62 = vector.shape_cast %59 : vector<8x128xf32> to vector<1x8x128xf32>
    tpu.vector_store %arg3[%c1_13, %c0_14, %c0_15], %62 {strides = array<i32>} : memref<2x8x128xf32, #tpu.memory_space<vmem>>, vector<1x8x128xf32>,
    return
  }
  func.func @transform_0(%arg0: i32) -> i32 {
    %c0_i32 = arith.constant 0 : i32
    %c0_i32_0 = arith.constant 0 : i32
    return %c0_i32 : i32
  }
  func.func @transform_1(%arg0: i32) -> (i32, i32, i32) {
    %c0_i32 = arith.constant 0 : i32
    %c0_i32_0 = arith.constant 0 : i32
    %c0_i32_1 = arith.constant 0 : i32
    return %c0_i32, %arg0, %c0_i32_0 : i32, i32, i32
  }
  func.func @transform_2(%arg0: i32) -> (i32, i32, i32) {
    %c0_i32 = arith.constant 0 : i32
    %c0_i32_0 = arith.constant 0 : i32
    %c0_i32_1 = arith.constant 0 : i32
    return %c0_i32, %arg0, %c0_i32_0 : i32, i32, i32
  }
}

</mosaic_0001>

<bundles_post_ra>
// kernel: tpu_custom_call.1
= control target key start
LH: loop header
LB: loop body
LE: loop exit
PB: predicated region body
PF: predicated region fallthrough
CT: control target
= control target key end

     0   :  { %7 = vsyncpa [#allocation5], 0  ;;  %s751_s0 = inlined_call_operand.hbm [shape: f32[12], index: 0, kind: input, shape index: {}]   ;;  %s752_s1 = inlined_call_operand.hbm [shape: f32[3,16,128], index: 1, kind: input, shape index: {}]   ;;  %s753_s2 = inlined_call_operand.hbm [shape: f32[2,16,128], index: 2, kind: output, shape index: {}]  }
   0x1   :  { %8 = vsyncpa [#allocation3], 0 }
   0x2   :  { %10 = vsyncpa [#allocation3 + $0x1], 0 }
   0x3   :  { %11 = vsyncpa [#allocation4], 0 }
   0x4   :  { %13 = vsyncpa [#allocation4 + $0x1], 0  ;;  %s560_s9 = smov 0   ;;  %s562_s10 = smov 0  }
   0x5   :  { %s564_s11 = smov 0   ;;  %s566_s12 = smov 0  }
   0x6 LB: > { %s581_s13 = sadd.s32 4294967295, %s534_s12   ;;  %s328_s14 = sadd.s32 4294967294, %s534_s12   ;;  %s534_s12 = sphi %s566_s12, %s773_s12   ;;  %s530_s11 = sphi %s564_s11, %s772_s11   ;;  %s526_s10 = sphi %s562_s10, %s771_s10   ;;  %s522_s9 = sphi %s560_s9, %s770_s9  }
   0x7   : > { %s585_s15 = sadd.s32 1, %s534_s12   ;;  %s47_s16 = sadd.s32 1, %s530_s11 }
   0x8   : > { %s44_s17 = ssub.s32 %s534_s12, %s585_s15  ;;  %p54_p0 = scmp.ne.s32.totalorder %s530_s11, %s526_s10 }
   0x9   : > { %p45_p1 = scmp.eq.s32.totalorder %s44_s17, 0  ;;  %p55_p2 = scmp.eq.s32.totalorder %s534_s12, 0 }
   0xa   : > { %p60_p3 = scmp.ne.s32.totalorder %s526_s10, %s522_s9  ;;  %p754_p4 = scmp.eq.s32.totalorder %s581_s13, 0 }
   0xb   : > { %s597_s18 = scalar_select %p45_p1, %s530_s11, %s47_s16  }
   0xc   : > { %p599_p5 = por %p55_p2, %p54_p0  ;;  %p605_p6 = por %p754_p4, %p60_p3 }
   0xd   : > { %p84_p7 = scmp.eq.s32.totalorder %s581_s13, 1  ;;  %p90_p8 = scmp.eq.s32.totalorder %s328_s14, 1 }
   0xe   : > { %s758_s20 = scalar_select %p605_p6, 1, 0 }
   0xf   : > { %p329_p9 = scmp.ge.s32.totalorder %s534_s12, 1  ;;  %p97_p10 = scmp.lt.s32.totalorder %s534_s12, 3 }
  0x10   : > { %p612_p11 = por %p84_p7, %p54_p0  ;;  %p616_p12 = por %p90_p8, %p60_p3 }
  0x11   : > { %p620_p13 = pnand %p329_p9, %p97_p10  ;;  %p377_p4 = scmp.lt.s32.totalorder %s534_s12, 2 }
  0x12   : > { %s759_s21 = scalar_select %p612_p11, 1, 0 }
  0x13   : > { %s760_s22 = scalar_select %p616_p12, 1, 0 }
  0x14   : > { %p364_p2 = pneg %p620_p13  ;;  %s119_s24 = sand.u32 1, %s530_s11  }
  0x15   : > { %s332_s25 = sshll.u32 %s534_s12, 7  ;;  %p762_p6 = scmp.eq.s32.totalorder %s581_s13, 0 }
  0x16   : > { %p634_p7 = pnand %p377_p4, %p599_p5  ;;  %s354_s27 = smul.u32 24, %s119_s24 }
  0x17   : > { %p365_p0 = pnand %p364_p2, %p762_p6  ;;  %s421_s30 = scalar_lea.hbm %s751_s0, 16 }
  0x18   : > { %p422_p3 = scmp.ne.s32.totalorder %s751_s0, %s421_s30  ;;  %p428_p6 = scmp.lt.u32.totalorder %s421_s30, %s751_s0 }
  0x19   : > { %p423_p8 = pneg %p365_p0 }
  0x1b   : > { %p424_p9 = pnand %p423_p8, %p422_p3 }
  0x1d   : > { %p425_p10 = pneg %p424_p9 }
  0x1f   : > { %p430_p4 = pnand %p428_p6, %p425_p10 }
  0x21   : > { %433 = shalt.err (!%p430_p4)
}
  0x22   : > { %s536_s7 = smov [#allocation2]   ;;  %s653_s19 = scalar_lea.hbm %s752_s1, %s332_s25 }
  0x23   : > { %367 = dma.hbm_to_smem (!%p365_p0), %s751_s0, 16, %s536_s7, [#allocation5]  }
  0x24   : > { %s123_s28 = scalar_lea.vmem [#allocation6], %s354_s27  ;;  %s657_s30 = scalar_lea.sflag [#allocation3], %s119_s24 }
  0x25   : > { %s129_s29 = sshll.u32 %s123_s28, 4  ;;  %s434_s3 = scalar_lea.hbm %s653_s19, 384  ;;  %s655_s29 = int_to_ptr.vmem [resolvable:$true] %s129_s29 }
  0x26   : > { %p435_p5 = scmp.ne.s32.totalorder %s653_s19, %s434_s3  ;;  %p436_p2 = pneg %p634_p7 }
  0x27   : > { %s439_s5 = scalar_lea.hbm %s752_s1, 768  ;;  %p440_p8 = scmp.lt.u32.totalorder %s653_s19, %s752_s1 }
  0x28   : > { %p437_p0 = pnand %p436_p2, %p435_p5  ;;  %p441_p9 = scmp.lt.u32.totalorder %s439_s5, %s434_s3 }
  0x29   : > { %p443_p6 = scmp.lt.u32.totalorder %s434_s3, %s653_s19 }
  0x2a   : > { %p438_p3 = pneg %p437_p0  ;;  %p442_p10 = por %p441_p9, %p440_p8 }
  0x2c   : > { %p444_p4 = por %p443_p6, %p442_p10 }
  0x2e   : > { %p445_p1 = pnand %p444_p4, %p438_p3 }
  0x30   : > { %448 = shalt.err (!%p445_p1)
}
  0x31   : > { %s449_s24 = scalar_lea.vmem %s655_s29, 384  ;;  %s537_s27 = smov [#allocation6]  }
  0x32   : > { %p450_p5 = scmp.ne.s32.totalorder %s655_s29, %s449_s24  ;;  %s454_s8 = sshll.u32 %s537_s27, 4  ;;  %s455_s8 = int_to_ptr.vmem [resolvable:$false] %s454_s8 }
  0x33   : > { %s456_s14 = scalar_lea.vmem %s455_s8, 768  ;;  %p457_p11 = scmp.lt.s32.totalorder %s655_s29, %s455_s8 }
  0x34   : > { %p452_p0 = pnand %p450_p5, %p436_p2  ;;  %p458_p8 = scmp.lt.s32.totalorder %s456_s14, %s449_s24 }
  0x36   : > { %p453_p12 = pneg %p452_p0  ;;  %p459_p9 = por %p458_p8, %p457_p11 }
  0x38   : > { %p460_p10 = pnand %p459_p9, %p453_p12 }
  0x3a   : > { %463 = shalt.err (!%p460_p10)
}
  0x3b   : > { %s538_s16 = smov 256   ;;  %s539_s17 = smov 128  }
  0x3c   : > { %s540_s28 = smov 8   ;;  %141 = sbr.rel (%p620_p13) target bundleno = 127 (0x7f), region = 28 }
  0x3d   : > { %371 = dma.hbm_to_vmem [thread:$0]  (!%p634_p7), %s653_s19, 384, %s655_s29, %s657_s30, %s538_s16, %s539_s17, %s540_s28  }
  0x3e   : > { %p764_p1 = scmp.eq.s32.totalorder (!%p620_p13), %s581_s13, 0 }
  0x43   : > { %509 = dma.done.wait (%p764_p1), [#allocation5], 16   ;;  %p765_p2 = pmov %p764_p1 }
  0x44   : > { %s692_s3 = sand.u32 1, %s526_s10   ;;  %p766_p11 = scmp.ne.s32.totalorder %s758_s20, 0 }
  0x45   : > { %511 = vsyncadd (%p765_p2), [#allocation5], 4294967280  ;;  %s355_s25 = smul.u32 24, %s692_s3  ;;  %s148_s4 = scalar_lea.sflag [#allocation3], %s692_s3 }
  0x47   : > { %s151_s5 = scalar_lea.vmem [#allocation6], %s355_s25 }
  0x48   : > { %513 = dma.done.wait (%p766_p11), %s148_s4, 384  }
  0x49   : > { %515 = vsyncadd (%p766_p11), %s148_s4, 4294966912 }
  0x4a   : > { %156 = sfence }
  0x4b   : > { %s343_s23 = sld [smem:[#allocation2 + $0x6]]  ;;  %s344_s26 = sld [smem:[#allocation2 + $0x7]]  ;;  %v173_v0 = vld [vmem:[%s151_s5] sm:$0xff]  ;;  %v336_v1 = vld [vmem:[%s151_s5 + $0x8] sm:$0xff]  ;;  %v337_v2 = vld [vmem:[%s151_s5 + $0x10] sm:$0xff] }
  0x4c   : > { %s345_s19 = sld [smem:[#allocation2 + $0x8]]  ;;  %s348_s29 = sld [smem:[#allocation2 + $0xb]] }
  0x4d   : > { %s178_s30 = sld [smem:[#allocation2]]  ;;  %s338_s6 = sld [smem:[#allocation2 + $0x1]] }
  0x4e   : > { %s340_s7 = sld [smem:[#allocation2 + $0x3]]  ;;  %s341_s24 = sld [smem:[#allocation2 + $0x4]] }
  0x4f   : > { %s339_s20 = sld [smem:[#allocation2 + $0x2]]  ;;  %s342_s27 = sld [smem:[#allocation2 + $0x5]] }
  0x50   : > { %s346_s8 = sld [smem:[#allocation2 + $0x9]]  ;;  %s347_s14 = sld [smem:[#allocation2 + $0xa]] }
  0x51   : > { %v210_v3 = vstv %s343_s23  ;;  %v212_v5 = vstv %s344_s26  ;;  %s335_s16 = sshll.u32 %s692_s3, 4  ;;  %s351_s25 = sshll.u32 %s581_s13, 7 }
  0x52   : > { %v211_v4 = vmul.f32 %v210_v3, %v173_v0  ;;  %v215_v6 = vstv %s345_s19  ;;  %v213_v7 = vmul.f32 %v336_v1, %v212_v5  ;;  %v218_v10 = vstv %s348_s29  ;;  %s172_s17 = scalar_lea.vmem [#allocation7], %s335_s16  ;;  %s707_s23 = scalar_lea.hbm %s753_s2, %s351_s25 }
  0x53   : > { %v216_v8 = vmul.f32 %v337_v2, %v215_v6  ;;  %v190_v13 = vstv %s178_s30  ;;  %v192_v14 = vstv %s338_s6  ;;  %s243_s28 = sshll.u32 %s172_s17, 4  ;;  %s231_s26 = scalar_lea.sflag [#allocation4], %s692_s3  ;;  %s702_s28 = int_to_ptr.vmem [resolvable:$true] %s243_s28 }
  0x54   : > { %v214_v9 = vadd.f32 %v213_v7, %v211_v4  ;;  %v200_v16 = vstv %s340_s7  ;;  %v202_v17 = vstv %s341_s24  ;;  %v191_v18 = vmul.f32 %v190_v13, %v173_v0  ;;  %s464_s19 = scalar_lea.vmem %s702_s28, 256  ;;  %p767_p13 = scmp.ne.s32.totalorder %s759_s21, 0 }
  0x55   : > { %v193_v19 = vmul.f32 %v336_v1, %v192_v14  ;;  %v201_v20 = vmul.f32 %v200_v16, %v173_v0  ;;  %v203_v21 = vmul.f32 %v336_v1, %v202_v17  ;;  %v195_v22 = vstv %s339_s20  ;;  %p465_p12 = scmp.ne.s32.totalorder %s702_s28, %s464_s19  ;;  %s541_s13 = smov [#allocation7]  }
  0x56   : > { %v217_v11 = vadd.f32 %v216_v8, %v214_v9  ;;  %v205_v23 = vstv %s342_s27  ;;  %v196_v25 = vmul.f32 %v337_v2, %v195_v22  ;;  %v198_v31 = vstv %s346_s8  ;;  %s468_s29 = sshll.u32 %s541_s13, 4  ;;  %s469_s29 = int_to_ptr.vmem [resolvable:$false] %s468_s29 }
  0x57   : > { %v194_v24 = vadd.f32 %v193_v19, %v191_v18  ;;  %v204_v26 = vadd.f32 %v203_v21, %v201_v20  ;;  %v206_v27 = vmul.f32 %v337_v2, %v205_v23  ;;  %v208_v32 = vstv %s347_s14  ;;  %p466_p7 = pnand %p465_p12, %p767_p13  ;;  %s470_s30 = scalar_lea.vmem %s469_s29, 512 }
  0x58   : > { %v219_v12 = vadd.f32 %v218_v10, %v217_v11  ;;  %p471_p6 = scmp.lt.s32.totalorder %s702_s28, %s469_s29  ;;  %p472_p4 = scmp.lt.s32.totalorder %s470_s30, %s464_s19 }
  0x59   : > { %v197_v28 = vadd.f32 %v196_v25, %v194_v24  ;;  %v207_v29 = vadd.f32 %v206_v27, %v204_v26  ;;  %p467_p3 = pneg %p466_p7 }
  0x5a   : > { %v220_v15 = vadd.f32 1e-08, %v219_v12  ;;  %p473_p5 = por %p472_p4, %p471_p6 }
  0x5b   : > { %v199_v34 = vadd.f32 %v198_v31, %v197_v28  ;;  %v209_v36 = vadd.f32 %v208_v32, %v207_v29 }
  0x5c   : > { %419 = vrcp.f32 %v220_v15  ;;  %p474_p0 = pnand %p473_p5, %p467_p3 }
  0x66   : > { %v420_v30 = vpop.eup %419 }
  0x67   : > { %v222_v33 = vmul.f32 %v420_v30, %v220_v15 }
  0x69   : > { %v223_v35 = vsub.f32 2.0, %v222_v33 }
  0x6b   : > { %v224_v37 = vmul.f32 %v420_v30, %v223_v35 }
  0x6d   : > { %v225_v38 = vmul.f32 %v224_v37, %v199_v34  ;;  %v227_v39 = vmul.f32 %v224_v37, %v209_v36 }
  0x6f   : > { %226 = vst [vmem:[%s172_s17] sm:$0xff] %v225_v38  ;;  %349 = vst [vmem:[%s172_s17 + $0x8] sm:$0xff] %v227_v39 }
  0x70   : > { %477 = shalt.err (!%p474_p0)
}
  0x71   : > { %s478_s6 = scalar_lea.hbm %s707_s23, 256  ;;  %s482_s20 = scalar_lea.hbm %s753_s2, 512 }
  0x72   : > { %p479_p8 = scmp.ne.s32.totalorder %s707_s23, %s478_s6  ;;  %p483_p1 = scmp.lt.u32.totalorder %s707_s23, %s753_s2 }
  0x73   : > { %p484_p2 = scmp.lt.u32.totalorder %s482_s20, %s478_s6  ;;  %p486_p12 = scmp.lt.u32.totalorder %s478_s6, %s707_s23 }
  0x74   : > { %p480_p9 = pnand %p479_p8, %p767_p13 }
  0x75   : > { %p485_p11 = por %p484_p2, %p483_p1 }
  0x76   : > { %p481_p10 = pneg %p480_p9 }
  0x77   : > { %p487_p7 = por %p486_p12, %p485_p11 }
  0x79   : > { %p488_p3 = pnand %p487_p7, %p481_p10 }
  0x7b   : > { %491 = shalt.err (!%p488_p3)
}
  0x7c   : > { %s542_s14 = smov 128   ;;  %s543_s16 = smov 256  }
  0x7d   : > { %s544_s17 = smov 8  }
  0x7e   : > { %362 = dma.vmem_to_hbm [thread:$0]  (%p767_p13), %s702_s28, 256, %s707_s23, %s231_s26, %s542_s14, %s543_s16, %s544_s17  }
  0x7f PF: > { %s258_s25 = sand.u32 1, %s522_s9   ;;  %p768_p6 = scmp.ne.s32.totalorder %s760_s22, 0 }
  0x80   : > { %p769_p4 = scmp.ge.s32.totalorder %s534_s12, 2  ;;  %s259_s4 = scalar_lea.sflag [#allocation4], %s258_s25 }
  0x82   : > { %p373_p5 = pnand %p769_p4, %p768_p6 }
  0x84   : > { %517 = dma.done.wait (!%p373_p5), %s259_s4, 256  }
  0x85   : > { %519 = vsyncadd (!%p373_p5), %s259_s4, 4294967040  ;;  %p16_p0 = scmp.ge.s32.totalorder %s585_s15, 4   ;;  %s770_s9 = smov %s526_s10 }
  0x86   : > { %s771_s10 = smov %s530_s11  ;;  %s772_s11 = smov %s597_s18 }
  0x87   : > { %s773_s12 = smov %s585_s15  ;;  %18 = sbr.rel (!%p16_p0) target bundleno = 6 (0x6), region = 81 }
  0x8e   :  { %264 = vsyncpa [#allocation3], 1 }
  0x8f   :  { %266 = vsyncpa [#allocation3 + $0x1], 1 }
  0x90   :  { %267 = vsyncpa [#allocation4], 1 }
  0x91   :  { %269 = vsyncpa [#allocation4 + $0x1], 1 }
  0x92   :  { %270 = vsyncpa [#allocation5], 1 }
  0x93   :  { %272 = vsyncpa [#allocation5 + $0x1], 1 }

</bundles_post_ra>
